<compile_context>
chip_gen: v6e
topology: v6e:2x2x1
jax: 0.10.0
libtpu: 0.0.40
codegen_flags: <defaults>
</compile_context>

<pallas_src>
import jax
import jax.numpy as jnp
from jax.experimental import pallas as pl
from jax.experimental.pallas import tpu as pltpu


def _round_up(x, m):
    return (x + m - 1) // m * m


def _leaky_relu(x, negative_slope=0.01):
    return jnp.where(x >= 0, x, negative_slope * x)


def distance_net_kernel(x_ref, w1_ref, b1_ref, w2_ref, b2_ref, o_ref):
    # Cast x in-kernel (x arrives in its original dtype; no extra wrapper pass over x).
    x = x_ref[...].astype(w1_ref.dtype)
    # Layer 1: (TB, IN) @ (IN, Hp) on the MXU, f32 accumulate; bias + leaky_relu in f32.
    h = jnp.dot(x, w1_ref[...], preferred_element_type=jnp.float32)
    h = _leaky_relu(h + b1_ref[...])
    # Layer 2: cast activations back to the matmul dtype for the second MXU pass.
    h = h.astype(w2_ref.dtype)
    y = jnp.dot(h, w2_ref[...], preferred_element_type=jnp.float32)
    y = _leaky_relu(y + b2_ref[...])
    # Store only the real barcode columns (unpadded output -> no writeback amplification).
    o_ref[...] = y[:, : o_ref.shape[1]].astype(o_ref.dtype)


def prepare_distance_net_params(w1, b1, w2, b2, *, compute_dtype=jnp.bfloat16):
    """One-time preprocessing (do at model-build time, NOT per forward call).

    Accepts PyTorch nn.Linear layout: w1 (hidden, in), b1 (hidden,),
    w2 (barcode, hidden), b2 (barcode,). Pads hidden/barcode to lane multiples
    (zeros, so results are unchanged), transposes to (in, out), and casts weights
    to the matmul compute dtype. Biases stay f32 (epilogue runs in f32).
    """
    hidden, in_size = w1.shape
    barcode = w2.shape[0]
    H_pad = _round_up(hidden, 128)
    C_pad = _round_up(barcode, 128)

    w1t = jnp.asarray(w1, jnp.float32).T           # (in, hidden)
    w2t = jnp.asarray(w2, jnp.float32).T           # (hidden, barcode)
    b1 = jnp.asarray(b1, jnp.float32).reshape(1, hidden)
    b2 = jnp.asarray(b2, jnp.float32).reshape(1, barcode)

    w1p = jnp.zeros((in_size, H_pad), jnp.float32).at[:, :hidden].set(w1t)
    b1p = jnp.zeros((1, H_pad), jnp.float32).at[:, :hidden].set(b1)
    w2p = jnp.zeros((H_pad, C_pad), jnp.float32).at[:hidden, :barcode].set(w2t)
    b2p = jnp.zeros((1, C_pad), jnp.float32).at[:, :barcode].set(b2)

    return dict(
        w1=w1p.astype(compute_dtype),
        b1=b1p,
        w2=w2p.astype(compute_dtype),
        b2=b2p,
        in_size=in_size, hidden=hidden, barcode=barcode,
        H_pad=H_pad, C_pad=C_pad,
    )


def _choose_batch_tiling(B, tile_b):
    # Number of batch tiles: each tile <= ~tile_b rows, and for mid/large batches force
    # >= 2 tiles so v7x's second TensorCore is not idle (grid axis is "parallel").
    n_tiles = max(1, -(-B // tile_b))
    if n_tiles == 1 and B >= 256:
        n_tiles = 2
    TB = _round_up(-(-B // n_tiles), 8)   # multiple of 8 sublanes, minimal overshoot
    B_pad = n_tiles * TB
    return TB, B_pad, n_tiles


def distance_net_forward(x, params, *, tile_b=1024, out_dtype=jnp.float32):
    """DistanceNet forward. x: (B, input_size) f32; params from prepare_distance_net_params."""
    B, in_size = x.shape
    assert in_size == params["in_size"]
    H_pad, C_pad, barcode = params["H_pad"], params["C_pad"], params["barcode"]

    TB, B_pad, n_tiles = _choose_batch_tiling(B, tile_b)
    xp = x if B_pad == B else jnp.zeros((B_pad, in_size), x.dtype).at[:B].set(x)

    # Explicit VMEM budget: 2x weights/biases (covers the no-Buffered fallback) plus
    # double-buffered x/out tiles, with headroom; capped at v7x's 64 MiB physical VMEM.
    weight_bytes = (params["w1"].size * params["w1"].dtype.itemsize
                    + params["w2"].size * params["w2"].dtype.itemsize
                    + params["b1"].size * 4 + params["b2"].size * 4)
    stream_bytes = 2 * TB * (in_size * xp.dtype.itemsize
                             + barcode * jnp.dtype(out_dtype).itemsize)
    vmem_limit = int(min(max(2 * weight_bytes + stream_bytes + (8 << 20), 32 << 20),
                         64 << 20))

    def _call(weight_pipeline_mode):
        w_kwargs = ({} if weight_pipeline_mode is None
                    else dict(pipeline_mode=weight_pipeline_mode))
        in_specs = [
            # x: tiled over batch (streamed, default double buffering).
            pl.BlockSpec((TB, in_size), lambda i: (i, 0)),
            # Weights / biases: constant index_map -> VMEM-resident, single buffer.
            pl.BlockSpec((in_size, H_pad), lambda i: (0, 0), **w_kwargs),
            pl.BlockSpec((1, H_pad), lambda i: (0, 0), **w_kwargs),
            pl.BlockSpec((H_pad, C_pad), lambda i: (0, 0), **w_kwargs),
            pl.BlockSpec((1, C_pad), lambda i: (0, 0), **w_kwargs),
        ]
        return pl.pallas_call(
            distance_net_kernel,
            out_shape=jax.ShapeDtypeStruct((B_pad, barcode), out_dtype),
            grid=(n_tiles,),
            in_specs=in_specs,
            out_specs=pl.BlockSpec((TB, barcode), lambda i: (i, 0)),
            compiler_params=pltpu.CompilerParams(
                dimension_semantics=("parallel",),
                vmem_limit_bytes=vmem_limit),
        )(xp, params["w1"], params["b1"], params["w2"], params["b2"])

    try:
        out = _call(pl.Buffered(1) if hasattr(pl, "Buffered") else None)
    except Exception:
        # Fallback if this JAX version rejects single-buffered pipeline_mode.
        out = _call(None)

    return out[:B] if B_pad != B else out


def reference_forward(x, w1, b1, w2, b2):
    # Pure-JAX reference with PyTorch nn.Linear layout: w (out, in), b (out,).
    h = jax.nn.leaky_relu(x @ w1.T + b1, negative_slope=0.01)
    return jax.nn.leaky_relu(h @ w2.T + b2, negative_slope=0.01)


if __name__ == "__main__":
    # Small shapes consistent with the module's forward.
    batch = 8
    input_size = 32
    hidden_layer_size = 64
    barcode_size = 16

    key = jax.random.PRNGKey(0)
    kx, k1w, k1b, k2w, k2b = jax.random.split(key, 5)

    x = jax.random.normal(kx, (batch, input_size), dtype=jnp.float32)

    # Deterministic synthetic parameters in PyTorch nn.Linear layout: (out, in) / (out,).
    w1 = jax.random.normal(k1w, (hidden_layer_size, input_size), dtype=jnp.float32) * 0.1
    b1 = jax.random.normal(k1b, (hidden_layer_size,), dtype=jnp.float32) * 0.1
    w2 = jax.random.normal(k2w, (barcode_size, hidden_layer_size), dtype=jnp.float32) * 0.1
    b2 = jax.random.normal(k2b, (barcode_size,), dtype=jnp.float32) * 0.1

    ref = reference_forward(x, w1, b1, w2, b2)

    # f32 matmul path: same semantics as the original module (tight check).
    params_f32 = prepare_distance_net_params(w1, b1, w2, b2, compute_dtype=jnp.float32)
    out_f32 = jax.block_until_ready(distance_net_forward(x, params_f32))
    assert out_f32.shape == (batch, barcode_size)
    assert jnp.allclose(out_f32, ref, atol=1e-4, rtol=1e-4), "f32 path mismatch vs reference"

    # bf16-matmul path (perf config): f32 accumulation, loose tolerance.
    params_bf16 = prepare_distance_net_params(w1, b1, w2, b2, compute_dtype=jnp.bfloat16)
    out_bf16 = jax.block_until_ready(distance_net_forward(x, params_bf16))
    assert out_bf16.shape == (batch, barcode_size)
    assert jnp.allclose(out_bf16, ref, atol=5e-2, rtol=5e-2), "bf16 path mismatch vs reference"

    print("KERNEL_OK")
</pallas_src>

<mosaic_0001>
module attributes {stable_mosaic.version = 11 : i64} {
  func.func @distance_net_kernel(%arg0: i32, %arg1: memref<8x32xf32, #tpu.memory_space<vmem>>, %arg2: memref<32x128xf32, #tpu.memory_space<vmem>>, %arg3: memref<1x128xf32, #tpu.memory_space<vmem>>, %arg4: memref<128x128xf32, #tpu.memory_space<vmem>>, %arg5: memref<1x128xf32, #tpu.memory_space<vmem>>, %arg6: memref<8x16xf32, #tpu.memory_space<vmem>>) attributes {dimension_semantics = [#tpu.dimension_semantics<parallel>], iteration_bounds = array<i64: 1>, scalar_prefetch = 0 : i64, scratch_operands = 0 : i64, tpu.core_type = #tpu.core_type<tc>, window_params = [{transform_indices = @transform_0, window_bounds = array<i64: 8, 32>}, {pipeline_mode = #tpu.pipeline_mode<synchronous>, transform_indices = @transform_1, window_bounds = array<i64: 32, 128>}, {pipeline_mode = #tpu.pipeline_mode<synchronous>, transform_indices = @transform_2, window_bounds = array<i64: 1, 128>}, {pipeline_mode = #tpu.pipeline_mode<synchronous>, transform_indices = @transform_3, window_bounds = array<i64: 128, 128>}, {pipeline_mode = #tpu.pipeline_mode<synchronous>, transform_indices = @transform_4, window_bounds = array<i64: 1, 128>}, {transform_indices = @transform_5, window_bounds = array<i64: 8, 16>}]} {
    %c0 = arith.constant 0 : index
    %c0_0 = arith.constant 0 : index
    %0 = vector.load %arg1[%c0, %c0_0] : memref<8x32xf32, #tpu.memory_space<vmem>>, vector<8x32xf32>
    %c0_1 = arith.constant 0 : index
    %c0_2 = arith.constant 0 : index
    %1 = vector.load %arg2[%c0_1, %c0_2] : memref<32x128xf32, #tpu.memory_space<vmem>>, vector<32x128xf32>
    %cst = arith.constant dense<0.000000e+00> : vector<8x128xf32>
    %2 = tpu.matmul %0, %1, %cst {dimension_numbers = #tpu.dot_dimension_numbers<[1], [0], [0], [1], [0, 0, 1, 1], [], []>} : vector<8x32xf32>, vector<32x128xf32>, vector<8x128xf32> -> vector<8x128xf32>
    %c0_3 = arith.constant 0 : index
    %c0_4 = arith.constant 0 : index
    %3 = vector.load %arg3[%c0_3, %c0_4] : memref<1x128xf32, #tpu.memory_space<vmem>>, vector<1x128xf32>
    %4 = vector.broadcast %3 : vector<1x128xf32> to vector<8x128xf32>
    %5 = arith.addf %2, %4 : vector<8x128xf32>
    %cst_5 = arith.constant 0.000000e+00 : f32
    %6 = vector.broadcast %cst_5 : f32 to vector<8x128xf32>
    %7 = arith.cmpf oge, %5, %6 : vector<8x128xf32>
    %cst_6 = arith.constant 0.00999999977 : f32
    %8 = vector.broadcast %cst_6 : f32 to vector<8x128xf32>
    %9 = arith.mulf %8, %5 : vector<8x128xf32>
    %10 = arith.select %7, %5, %9 : vector<8x128xi1>, vector<8x128xf32>
    %c0_7 = arith.constant 0 : index
    %c0_8 = arith.constant 0 : index
    %11 = vector.load %arg4[%c0_7, %c0_8] : memref<128x128xf32, #tpu.memory_space<vmem>>, vector<128x128xf32>
    %cst_9 = arith.constant dense<0.000000e+00> : vector<8x128xf32>
    %12 = tpu.matmul %10, %11, %cst_9 {dimension_numbers = #tpu.dot_dimension_numbers<[1], [0], [0], [1], [0, 0, 1, 1], [], []>} : vector<8x128xf32>, vector<128x128xf32>, vector<8x128xf32> -> vector<8x128xf32>
    %c0_10 = arith.constant 0 : index
    %c0_11 = arith.constant 0 : index
    %13 = vector.load %arg5[%c0_10, %c0_11] : memref<1x128xf32, #tpu.memory_space<vmem>>, vector<1x128xf32>
    %14 = vector.broadcast %13 : vector<1x128xf32> to vector<8x128xf32>
    %15 = arith.addf %12, %14 : vector<8x128xf32>
    %cst_12 = arith.constant 0.000000e+00 : f32
    %16 = vector.broadcast %cst_12 : f32 to vector<8x128xf32>
    %17 = arith.cmpf oge, %15, %16 : vector<8x128xf32>
    %cst_13 = arith.constant 0.00999999977 : f32
    %18 = vector.broadcast %cst_13 : f32 to vector<8x128xf32>
    %19 = arith.mulf %18, %15 : vector<8x128xf32>
    %20 = arith.select %17, %15, %19 : vector<8x128xi1>, vector<8x128xf32>
    %21 = vector.extract_strided_slice %20 {offsets = [0, 0], sizes = [8, 16], strides = [1, 1]} : vector<8x128xf32> to vector<8x16xf32>
    %c0_14 = arith.constant 0 : index
    %c0_15 = arith.constant 0 : index
    %22 = vector.load %arg6[%c0_14, %c0_15] : memref<8x16xf32, #tpu.memory_space<vmem>>, vector<8x16xf32>
    tpu.vector_store %arg6[%c0_14, %c0_15], %21 {strides = array<i32>} : memref<8x16xf32, #tpu.memory_space<vmem>>, vector<8x16xf32>,
    return
  }
  func.func @transform_0(%arg0: i32) -> (i32, i32) {
    %c0_i32 = arith.constant 0 : i32
    %c0_i32_0 = arith.constant 0 : i32
    return %arg0, %c0_i32 : i32, i32
  }
  func.func @transform_1(%arg0: i32) -> (i32, i32) {
    %c0_i32 = arith.constant 0 : i32
    %c0_i32_0 = arith.constant 0 : i32
    %c0_i32_1 = arith.constant 0 : i32
    return %c0_i32, %c0_i32_0 : i32, i32
  }
  func.func @transform_2(%arg0: i32) -> (i32, i32) {
    %c0_i32 = arith.constant 0 : i32
    %c0_i32_0 = arith.constant 0 : i32
    %c0_i32_1 = arith.constant 0 : i32
    return %c0_i32, %c0_i32_0 : i32, i32
  }
  func.func @transform_3(%arg0: i32) -> (i32, i32) {
    %c0_i32 = arith.constant 0 : i32
    %c0_i32_0 = arith.constant 0 : i32
    %c0_i32_1 = arith.constant 0 : i32
    return %c0_i32, %c0_i32_0 : i32, i32
  }
  func.func @transform_4(%arg0: i32) -> (i32, i32) {
    %c0_i32 = arith.constant 0 : i32
    %c0_i32_0 = arith.constant 0 : i32
    %c0_i32_1 = arith.constant 0 : i32
    return %c0_i32, %c0_i32_0 : i32, i32
  }
  func.func @transform_5(%arg0: i32) -> (i32, i32) {
    %c0_i32 = arith.constant 0 : i32
    %c0_i32_0 = arith.constant 0 : i32
    return %arg0, %c0_i32 : i32, i32
  }
}

module attributes {stable_mosaic.version = 11 : i64} {
  func.func @distance_net_kernel(%arg0: i32, %arg1: memref<8x32xf32, #tpu.memory_space<vmem>>, %arg2: memref<32x128xf32, #tpu.memory_space<vmem>>, %arg3: memref<1x128xf32, #tpu.memory_space<vmem>>, %arg4: memref<128x128xf32, #tpu.memory_space<vmem>>, %arg5: memref<1x128xf32, #tpu.memory_space<vmem>>, %arg6: memref<8x16xf32, #tpu.memory_space<vmem>>) attributes {dimension_semantics = [#tpu.dimension_semantics<parallel>], iteration_bounds = array<i64: 1>, scalar_prefetch = 0 : i64, scratch_operands = 0 : i64, tpu.core_type = #tpu.core_type<tc>, window_params = [{transform_indices = @transform_0, window_bounds = array<i64: 8, 32>}, {pipeline_mode = #tpu.pipeline_mode<synchronous>, transform_indices = @transform_1, window_bounds = array<i64: 32, 128>}, {pipeline_mode = #tpu.pipeline_mode<synchronous>, transform_indices = @transform_2, window_bounds = array<i64: 1, 128>}, {pipeline_mode = #tpu.pipeline_mode<synchronous>, transform_indices = @transform_3, window_bounds = array<i64: 128, 128>}, {pipeline_mode = #tpu.pipeline_mode<synchronous>, transform_indices = @transform_4, window_bounds = array<i64: 1, 128>}, {transform_indices = @transform_5, window_bounds = array<i64: 8, 16>}]} {
    %c0 = arith.constant 0 : index
    %c0_0 = arith.constant 0 : index
    %0 = vector.load %arg1[%c0, %c0_0] : memref<8x32xf32, #tpu.memory_space<vmem>>, vector<8x32xf32>
    %c0_1 = arith.constant 0 : index
    %c0_2 = arith.constant 0 : index
    %1 = vector.load %arg2[%c0_1, %c0_2] : memref<32x128xf32, #tpu.memory_space<vmem>>, vector<32x128xf32>
    %cst = arith.constant dense<0.000000e+00> : vector<8x128xf32>
    %2 = tpu.matmul %0, %1, %cst {dimension_numbers = #tpu.dot_dimension_numbers<[1], [0], [0], [1], [0, 0, 1, 1], [], []>} : vector<8x32xf32>, vector<32x128xf32>, vector<8x128xf32> -> vector<8x128xf32>
    %c0_3 = arith.constant 0 : index
    %c0_4 = arith.constant 0 : index
    %3 = vector.load %arg3[%c0_3, %c0_4] : memref<1x128xf32, #tpu.memory_space<vmem>>, vector<1x128xf32>
    %4 = vector.broadcast %3 : vector<1x128xf32> to vector<8x128xf32>
    %5 = arith.addf %2, %4 : vector<8x128xf32>
    %cst_5 = arith.constant 0.000000e+00 : f32
    %6 = vector.broadcast %cst_5 : f32 to vector<8x128xf32>
    %7 = arith.cmpf oge, %5, %6 : vector<8x128xf32>
    %cst_6 = arith.constant 0.00999999977 : f32
    %8 = vector.broadcast %cst_6 : f32 to vector<8x128xf32>
    %9 = arith.mulf %8, %5 : vector<8x128xf32>
    %10 = arith.select %7, %5, %9 : vector<8x128xi1>, vector<8x128xf32>
    %c0_7 = arith.constant 0 : index
    %c0_8 = arith.constant 0 : index
    %11 = vector.load %arg4[%c0_7, %c0_8] : memref<128x128xf32, #tpu.memory_space<vmem>>, vector<128x128xf32>
    %cst_9 = arith.constant dense<0.000000e+00> : vector<8x128xf32>
    %12 = tpu.matmul %10, %11, %cst_9 {dimension_numbers = #tpu.dot_dimension_numbers<[1], [0], [0], [1], [0, 0, 1, 1], [], []>} : vector<8x128xf32>, vector<128x128xf32>, vector<8x128xf32> -> vector<8x128xf32>
    %c0_10 = arith.constant 0 : index
    %c0_11 = arith.constant 0 : index
    %13 = vector.load %arg5[%c0_10, %c0_11] : memref<1x128xf32, #tpu.memory_space<vmem>>, vector<1x128xf32>
    %14 = vector.broadcast %13 : vector<1x128xf32> to vector<8x128xf32>
    %15 = arith.addf %12, %14 : vector<8x128xf32>
    %cst_12 = arith.constant 0.000000e+00 : f32
    %16 = vector.broadcast %cst_12 : f32 to vector<8x128xf32>
    %17 = arith.cmpf oge, %15, %16 : vector<8x128xf32>
    %cst_13 = arith.constant 0.00999999977 : f32
    %18 = vector.broadcast %cst_13 : f32 to vector<8x128xf32>
    %19 = arith.mulf %18, %15 : vector<8x128xf32>
    %20 = arith.select %17, %15, %19 : vector<8x128xi1>, vector<8x128xf32>
    %21 = vector.extract_strided_slice %20 {offsets = [0, 0], sizes = [8, 16], strides = [1, 1]} : vector<8x128xf32> to vector<8x16xf32>
    %c0_14 = arith.constant 0 : index
    %c0_15 = arith.constant 0 : index
    %22 = vector.load %arg6[%c0_14, %c0_15] : memref<8x16xf32, #tpu.memory_space<vmem>>, vector<8x16xf32>
    tpu.vector_store %arg6[%c0_14, %c0_15], %21 {strides = array<i32>} : memref<8x16xf32, #tpu.memory_space<vmem>>, vector<8x16xf32>,
    return
  }
  func.func @transform_0(%arg0: i32) -> (i32, i32) {
    %c0_i32 = arith.constant 0 : i32
    %c0_i32_0 = arith.constant 0 : i32
    return %arg0, %c0_i32 : i32, i32
  }
  func.func @transform_1(%arg0: i32) -> (i32, i32) {
    %c0_i32 = arith.constant 0 : i32
    %c0_i32_0 = arith.constant 0 : i32
    %c0_i32_1 = arith.constant 0 : i32
    return %c0_i32, %c0_i32_0 : i32, i32
  }
  func.func @transform_2(%arg0: i32) -> (i32, i32) {
    %c0_i32 = arith.constant 0 : i32
    %c0_i32_0 = arith.constant 0 : i32
    %c0_i32_1 = arith.constant 0 : i32
    return %c0_i32, %c0_i32_0 : i32, i32
  }
  func.func @transform_3(%arg0: i32) -> (i32, i32) {
    %c0_i32 = arith.constant 0 : i32
    %c0_i32_0 = arith.constant 0 : i32
    %c0_i32_1 = arith.constant 0 : i32
    return %c0_i32, %c0_i32_0 : i32, i32
  }
  func.func @transform_4(%arg0: i32) -> (i32, i32) {
    %c0_i32 = arith.constant 0 : i32
    %c0_i32_0 = arith.constant 0 : i32
    %c0_i32_1 = arith.constant 0 : i32
    return %c0_i32, %c0_i32_0 : i32, i32
  }
  func.func @transform_5(%arg0: i32) -> (i32, i32) {
    %c0_i32 = arith.constant 0 : i32
    %c0_i32_0 = arith.constant 0 : i32
    return %arg0, %c0_i32 : i32, i32
  }
}

</mosaic_0001>

<bundles_post_ra>
// kernel: tpu_custom_call.1
= control target key start
LH: loop header
LB: loop body
LE: loop exit
PB: predicated region body
PF: predicated region fallthrough
CT: control target
= control target key end

     0   :  { %10 = vsyncpa [#allocation3], 0  ;;  %s506_s0 = inlined_call_operand.hbm [shape: f32[8,32], index: 0, kind: input, shape index: {}]   ;;  %s507_s1 = inlined_call_operand.hbm [shape: f32[32,128], index: 1, kind: input, shape index: {}]   ;;  %s508_s2 = inlined_call_operand.vmem [shape: f32[1,128], index: 2, kind: input, shape index: {}]   ;;  %s509_s3 = inlined_call_operand.hbm [shape: f32[128,128], index: 3, kind: input, shape index: {}]   ;;  %s510_s4 = inlined_call_operand.vmem [shape: f32[1,128], index: 4, kind: input, shape index: {}]   ;;  %s511_s5 = inlined_call_operand.hbm [shape: f32[8,16], index: 5, kind: output, shape index: {}]  }
   0x1   :  { %11 = vsyncpa [#allocation6], 0 }
   0x2   :  { %12 = vsyncpa [#allocation4], 0  ;;  %s428_s18 = smov [#allocation5]  }
   0x3   :  { %s28_s19 = sshll.u32 %s428_s18, 4  ;;  %s29_s19 = int_to_ptr.vmem [resolvable:$true] %s28_s19 }
   0x4   :  { %s350_s20 = scalar_lea.vmem %s29_s19, 512  ;;  %p355_p1 = scmp.lt.s32.totalorder %s29_s19, %s29_s19 }
   0x5   :  { %p351_p0 = scmp.ne.s32.totalorder %s29_s19, %s350_s20  ;;  %p356_p2 = scmp.lt.s32.totalorder %s350_s20, %s350_s20 }
   0x7   :  { %p357_p3 = por %p356_p2, %p355_p1 }
   0x9   :  { %p358_p4 = pnand %p357_p3, %p351_p0 }
   0xb   :  { %361 = shalt.err (!%p358_p4)
}
   0xc   :  { %s429_s21 = smov 128   ;;  %s430_s22 = smov 8  }
   0xd   :  { %34 = dma.hbm_to_vmem [thread:$0]  %s507_s1, 512, %s29_s19, [#allocation6], %s429_s21, %s429_s21, %s430_s22  }
   0xe   :  { %s431_s25 = smov [#allocation2]   ;;  %s432_s27 = smov [#allocation7]  }
   0xf   :  { %s19_s26 = sshll.u32 %s431_s25, 4  ;;  %s42_s28 = sshll.u32 %s432_s27, 4  ;;  %s20_s26 = int_to_ptr.vmem [resolvable:$true] %s19_s26  ;;  %s43_s28 = int_to_ptr.vmem [resolvable:$true] %s42_s28 }
  0x10   :  { %s370_s29 = scalar_lea.vmem %s20_s26, 128  ;;  %p375_p6 = scmp.lt.s32.totalorder %s20_s26, %s20_s26 }
  0x11   :  { %p371_p5 = scmp.ne.s32.totalorder %s20_s26, %s370_s29  ;;  %p376_p7 = scmp.lt.s32.totalorder %s370_s29, %s370_s29 }
  0x13   :  { %p377_p8 = por %p376_p7, %p375_p6 }
  0x15   :  { %p378_p9 = pnand %p377_p8, %p371_p5 }
  0x17   :  { %381 = shalt.err (!%p378_p9)
}
  0x18   :  { %22 = dma.hbm_to_vmem [thread:$0]  %s506_s0, 128, %s20_s26, [#allocation3]  }
  0x19   :  { %s390_s7 = scalar_lea.vmem %s43_s28, 2048  ;;  %p395_p11 = scmp.lt.s32.totalorder %s43_s28, %s43_s28 }
  0x1a   :  { %p391_p10 = scmp.ne.s32.totalorder %s43_s28, %s390_s7  ;;  %p396_p12 = scmp.lt.s32.totalorder %s390_s7, %s390_s7 }
  0x1c   :  { %p397_p13 = por %p396_p12, %p395_p11 }
  0x1e   :  { %p398_p0 = pnand %p397_p13, %p391_p10 }
  0x20   :  { %401 = shalt.err (!%p398_p0)
}
  0x21   :  { %48 = dma.hbm_to_vmem [thread:$0]  %s509_s3, 2048, %s43_s28, [#allocation6], %s429_s21, %s429_s21, %s430_s22  }
  0x22   :  { %422 = dma.done.wait [#allocation3], 128  }
  0x23   :  { %423 = vsyncadd [#allocation3], 4294967168 }
  0x24   :  { %424 = dma.done.wait [#allocation6], 2560  }
  0x25   :  { %425 = vsyncadd [#allocation6], 4294964736  ;;  %v433_v0 = vmov 0.0   ;;  %vm434_vm0 = vmmov 0   ;;  %v64_v1 = vld [vmem:[#allocation5 + $0x18] sm:$0xff]  ;;  %v63_v2 = vld [vmem:[#allocation5 + $0x10] sm:$0xff] }
  0x26   :  { %288 = vmatprep.subr.mxu0 %v433_v0  ;;  %296 = vmatprep.mubr.msk.f32.mxu0 %vm434_vm0, %v433_v0  ;;  %v164_v3 = vld [vmem:[#allocation7 + $0x78] sm:$0xff]  ;;  %v62_v4 = vld [vmem:[#allocation5 + $0x8] sm:$0xff]  ;;  %v163_v5 = vld [vmem:[#allocation7 + $0x70] sm:$0xff]  ;;  %vm72_vm1 = vcmask 261120   ;;  %s435_s11 = smov [#allocation8]   ;;  %vm245_vm4 = vcmask 130048  }
  0x27   :  { %299 = vmatprep.subr.mxu1 %v433_v0  ;;  %331 = vmatprep.mubr.msk.f32.mxu1 %vm434_vm0, %v433_v0  ;;  %v162_v6 = vld [vmem:[#allocation7 + $0x68] sm:$0xff]  ;;  %v61_v7 = vld [vmem:[#allocation5] sm:$0xff]  ;;  %v60_v8 = vld [vmem:[#allocation2] sm:$0xff]  ;;  %s253_s12 = sshll.u32 %s435_s11, 4  ;;  %s254_s12 = int_to_ptr.vmem [resolvable:$true] %s253_s12 }
  0x28   :  { %289 = vmatpush3.msra.mxu0 %v64_v1  ;;  %300 = vmatpush3.msra.mxu1 %v164_v3  ;;  %v161_v9 = vld [vmem:[#allocation7 + $0x60] sm:$0xff]  ;;  %v160_v10 = vld [vmem:[#allocation7 + $0x58] sm:$0xff]  ;;  %v159_v11 = vld [vmem:[#allocation7 + $0x50] sm:$0xff]  ;;  %p407_p2 = scmp.lt.s32.totalorder %s254_s12, %s254_s12 }
  0x29   :  { %290 = vmatprep.subr.mxu0 %v433_v0  ;;  %301 = vmatprep.subr.mxu1 %v433_v0  ;;  %v158_v12 = vld [vmem:[#allocation7 + $0x48] sm:$0xff]  ;;  %v157_v13 = vld [vmem:[#allocation7 + $0x40] sm:$0xff]  ;;  %v156_v14 = vld [vmem:[#allocation7 + $0x38] sm:$0xff] }
  0x2a   :  { %291 = vmatpush3.msra.mxu0 %v63_v2  ;;  %302 = vmatpush3.msra.mxu1 %v163_v5  ;;  %v155_v15 = vld [vmem:[#allocation7 + $0x30] sm:$0xff]  ;;  %v154_v16 = vld [vmem:[#allocation7 + $0x28] sm:$0xff]  ;;  %v153_v17 = vld [vmem:[#allocation7 + $0x20] sm:$0xff] }
  0x2b   :  { %292 = vmatprep.subr.mxu0 %v433_v0  ;;  %303 = vmatprep.subr.mxu1 %v433_v0  ;;  %v152_v18 = vld [vmem:[#allocation7 + $0x18] sm:$0xff]  ;;  %v151_v19 = vld [vmem:[#allocation7 + $0x10] sm:$0xff]  ;;  %v150_v20 = vld [vmem:[#allocation7 + $0x8] sm:$0xff] }
  0x2c   :  { %293 = vmatpush3.msra.mxu0 %v62_v4  ;;  %304 = vmatpush3.msra.mxu1 %v162_v6  ;;  %v149_v21 = vld [vmem:[#allocation7] sm:$0xff]  ;;  %v263_v22 = vld [vmem:[%s508_s2] ss:$0 sm:$0xff]  ;;  %s402_s2 = scalar_lea.vmem %s254_s12, 128 }
  0x2d   :  { %294 = vmatprep.subr.mxu0 %v433_v0  ;;  %305 = vmatprep.subr.mxu1 %v433_v0  ;;  %v265_v28 = vld [vmem:[%s510_s4] ss:$0 sm:$0xff]  ;;  %p403_p1 = scmp.ne.s32.totalorder %s254_s12, %s402_s2  ;;  %p408_p3 = scmp.lt.s32.totalorder %s402_s2, %s402_s2 }
  0x2e   :  { %295 = vmatpush3.msra.mxu0 %v61_v7  ;;  %306 = vmatpush3.msra.mxu1 %v161_v9 }
  0x2f   :  { %297 = vmatmul.mubr.msk.f32.vlgmr.msra.gmra.mxu0 %vm72_vm1, %v60_v8  ;;  %307 = vmatprep.subr.mxu1 %v433_v0  ;;  %p409_p4 = por %p408_p3, %p407_p2 }
  0x30   :  { %308 = vmatpush3.msra.mxu1 %v160_v10 }
  0x31   :  { %309 = vmatprep.subr.mxu1 %v433_v0  ;;  %p410_p5 = pnand %p409_p4, %p403_p1 }
  0x32   :  { %310 = vmatpush3.msra.mxu1 %v159_v11 }
  0x33   :  { %311 = vmatprep.subr.mxu1 %v433_v0 }
  0x34   :  { %312 = vmatpush3.msra.mxu1 %v158_v12 }
  0x35   :  { %313 = vmatprep.subr.mxu1 %v433_v0 }
  0x36   :  { %314 = vmatpush3.msra.mxu1 %v157_v13 }
  0x37   :  { %315 = vmatprep.subr.mxu1 %v433_v0 }
  0x38   :  { %316 = vmatpush3.msra.mxu1 %v156_v14 }
  0x39   :  { %317 = vmatprep.subr.mxu1 %v433_v0 }
  0x3a   :  { %318 = vmatpush3.msra.mxu1 %v155_v15 }
  0x3b   :  { %319 = vmatprep.subr.mxu1 %v433_v0 }
  0x3c   :  { %320 = vmatpush3.msra.mxu1 %v154_v16 }
  0x3d   :  { %321 = vmatprep.subr.mxu1 %v433_v0 }
  0x3e   :  { %322 = vmatpush3.msra.mxu1 %v153_v17 }
  0x3f   :  { %323 = vmatprep.subr.mxu1 %v433_v0 }
  0x40   :  { %324 = vmatpush3.msra.mxu1 %v152_v18 }
  0x41   :  { %325 = vmatprep.subr.mxu1 %v433_v0 }
  0x42   :  { %326 = vmatpush3.msra.mxu1 %v151_v19 }
  0x43   :  { %327 = vmatprep.subr.mxu1 %v433_v0 }
  0x44   :  { %328 = vmatpush3.msra.mxu1 %v150_v20 }
  0x45   :  { %329 = vmatprep.subr.mxu1 %v433_v0 }
  0x46   :  { %330 = vmatpush3.msra.mxu1 %v149_v21 }
  0xef   :  { %v142_v23 = vpop.f32.mrf.mxu0 }
  0xf0   :  { %v143_v24 = vadd.f32 %v263_v22, %v142_v23 }
  0xf1   :  { %v298_v25 = vpop.f32.mrf.mxu0 }
  0xf2   :  { %v147_v26 = vmul.f32 0.01, %v143_v24  ;;  %vm146_vm2 = vcmp.ge.f32.partialorder %v143_v24, 0.0 }
  0xf4   :  { %v148_v27 = vsel %vm146_vm2, %v143_v24, %v147_v26 }
  0xf5   :  { %332 = vmatmul.mubr.f32.vlgmr.msra.gmra.mxu1 %v148_v27 }
 0x1b5   :  { %v238_v29 = vpop.f32.mrf.mxu1 }
 0x1b6   :  { %v239_v30 = vadd.f32 %v265_v28, %v238_v29 }
 0x1b7   :  { %v333_v31 = vpop.f32.mrf.mxu1 }
 0x1b8   :  { %vm242_vm3 = vcmp.ge.f32.partialorder %v239_v30, 0.0  ;;  %v243_v32 = vmul.f32 0.01, %v239_v30 }
 0x1ba   :  { %v244_v33 = vsel %vm242_vm3, %v239_v30, %v243_v32 }
 0x1bb   :  { %246 = vst.msk [vmem:[#allocation8] sm:$0xff] %vm245_vm4, %v244_v33 }
 0x1bc   :  { %413 = shalt.err (!%p410_p5)
}
 0x1bd   :  { %256 = dma.vmem_to_hbm [thread:$0]  %s254_s12, 128, %s511_s5, [#allocation4]  }
 0x1be   :  { %426 = dma.done.wait [#allocation4], 128  }
 0x1bf   :  { %427 = vsyncadd [#allocation4], 4294967168 }
 0x1c0   :  { %260 = vsyncpa [#allocation3], 1 }
 0x1c1   :  { %261 = vsyncpa [#allocation6], 1 }
 0x1c2   :  { %262 = vsyncpa [#allocation4], 1 }

// kernel: tpu_custom_call.1
= control target key start
LH: loop header
LB: loop body
LE: loop exit
PB: predicated region body
PF: predicated region fallthrough
CT: control target
= control target key end

     0   :  { %10 = vsyncpa [#allocation3], 0  ;;  %s506_s0 = inlined_call_operand.hbm [shape: f32[8,32], index: 0, kind: input, shape index: {}]   ;;  %s507_s1 = inlined_call_operand.hbm [shape: f32[32,128], index: 1, kind: input, shape index: {}]   ;;  %s508_s2 = inlined_call_operand.vmem [shape: f32[1,128], index: 2, kind: input, shape index: {}]   ;;  %s509_s3 = inlined_call_operand.hbm [shape: f32[128,128], index: 3, kind: input, shape index: {}]   ;;  %s510_s4 = inlined_call_operand.vmem [shape: f32[1,128], index: 4, kind: input, shape index: {}]   ;;  %s511_s5 = inlined_call_operand.hbm [shape: f32[8,16], index: 5, kind: output, shape index: {}]  }
   0x1   :  { %11 = vsyncpa [#allocation6], 0 }
   0x2   :  { %12 = vsyncpa [#allocation4], 0  ;;  %s428_s18 = smov [#allocation5]  }
   0x3   :  { %s28_s19 = sshll.u32 %s428_s18, 4  ;;  %s29_s19 = int_to_ptr.vmem [resolvable:$true] %s28_s19 }
   0x4   :  { %s350_s20 = scalar_lea.vmem %s29_s19, 512  ;;  %p355_p1 = scmp.lt.s32.totalorder %s29_s19, %s29_s19 }
   0x5   :  { %p351_p0 = scmp.ne.s32.totalorder %s29_s19, %s350_s20  ;;  %p356_p2 = scmp.lt.s32.totalorder %s350_s20, %s350_s20 }
   0x7   :  { %p357_p3 = por %p356_p2, %p355_p1 }
   0x9   :  { %p358_p4 = pnand %p357_p3, %p351_p0 }
   0xb   :  { %361 = shalt.err (!%p358_p4)
}
   0xc   :  { %s429_s21 = smov 128   ;;  %s430_s22 = smov 8  }
   0xd   :  { %34 = dma.hbm_to_vmem [thread:$0]  %s507_s1, 512, %s29_s19, [#allocation6], %s429_s21, %s429_s21, %s430_s22  }
   0xe   :  { %s431_s25 = smov [#allocation2]   ;;  %s432_s27 = smov [#allocation7]  }
   0xf   :  { %s19_s26 = sshll.u32 %s431_s25, 4  ;;  %s42_s28 = sshll.u32 %s432_s27, 4  ;;  %s20_s26 = int_to_ptr.vmem [resolvable:$true] %s19_s26  ;;  %s43_s28 = int_to_ptr.vmem [resolvable:$true] %s42_s28 }
  0x10   :  { %s370_s29 = scalar_lea.vmem %s20_s26, 128  ;;  %p375_p6 = scmp.lt.s32.totalorder %s20_s26, %s20_s26 }
  0x11   :  { %p371_p5 = scmp.ne.s32.totalorder %s20_s26, %s370_s29  ;;  %p376_p7 = scmp.lt.s32.totalorder %s370_s29, %s370_s29 }
  0x13   :  { %p377_p8 = por %p376_p7, %p375_p6 }
  0x15   :  { %p378_p9 = pnand %p377_p8, %p371_p5 }
  0x17   :  { %381 = shalt.err (!%p378_p9)
}
  0x18   :  { %22 = dma.hbm_to_vmem [thread:$0]  %s506_s0, 128, %s20_s26, [#allocation3]  }
  0x19   :  { %s390_s7 = scalar_lea.vmem %s43_s28, 2048  ;;  %p395_p11 = scmp.lt.s32.totalorder %s43_s28, %s43_s28 }
  0x1a   :  { %p391_p10 = scmp.ne.s32.totalorder %s43_s28, %s390_s7  ;;  %p396_p12 = scmp.lt.s32.totalorder %s390_s7, %s390_s7 }
  0x1c   :  { %p397_p13 = por %p396_p12, %p395_p11 }
  0x1e   :  { %p398_p0 = pnand %p397_p13, %p391_p10 }
  0x20   :  { %401 = shalt.err (!%p398_p0)
}
  0x21   :  { %48 = dma.hbm_to_vmem [thread:$0]  %s509_s3, 2048, %s43_s28, [#allocation6], %s429_s21, %s429_s21, %s430_s22  }
  0x22   :  { %422 = dma.done.wait [#allocation3], 128  }
  0x23   :  { %423 = vsyncadd [#allocation3], 4294967168 }
  0x24   :  { %424 = dma.done.wait [#allocation6], 2560  }
  0x25   :  { %425 = vsyncadd [#allocation6], 4294964736  ;;  %v433_v0 = vmov 0.0   ;;  %vm434_vm0 = vmmov 0   ;;  %v64_v1 = vld [vmem:[#allocation5 + $0x18] sm:$0xff]  ;;  %v63_v2 = vld [vmem:[#allocation5 + $0x10] sm:$0xff] }
  0x26   :  { %288 = vmatprep.subr.mxu0 %v433_v0  ;;  %296 = vmatprep.mubr.msk.f32.mxu0 %vm434_vm0, %v433_v0  ;;  %v164_v3 = vld [vmem:[#allocation7 + $0x78] sm:$0xff]  ;;  %v62_v4 = vld [vmem:[#allocation5 + $0x8] sm:$0xff]  ;;  %v163_v5 = vld [vmem:[#allocation7 + $0x70] sm:$0xff]  ;;  %vm72_vm1 = vcmask 261120   ;;  %s435_s11 = smov [#allocation8]   ;;  %vm245_vm4 = vcmask 130048  }
  0x27   :  { %299 = vmatprep.subr.mxu1 %v433_v0  ;;  %331 = vmatprep.mubr.msk.f32.mxu1 %vm434_vm0, %v433_v0  ;;  %v162_v6 = vld [vmem:[#allocation7 + $0x68] sm:$0xff]  ;;  %v61_v7 = vld [vmem:[#allocation5] sm:$0xff]  ;;  %v60_v8 = vld [vmem:[#allocation2] sm:$0xff]  ;;  %s253_s12 = sshll.u32 %s435_s11, 4  ;;  %s254_s12 = int_to_ptr.vmem [resolvable:$true] %s253_s12 }
  0x28   :  { %289 = vmatpush3.msra.mxu0 %v64_v1  ;;  %300 = vmatpush3.msra.mxu1 %v164_v3  ;;  %v161_v9 = vld [vmem:[#allocation7 + $0x60] sm:$0xff]  ;;  %v160_v10 = vld [vmem:[#allocation7 + $0x58] sm:$0xff]  ;;  %v159_v11 = vld [vmem:[#allocation7 + $0x50] sm:$0xff]  ;;  %p407_p2 = scmp.lt.s32.totalorder %s254_s12, %s254_s12 }
  0x29   :  { %290 = vmatprep.subr.mxu0 %v433_v0  ;;  %301 = vmatprep.subr.mxu1 %v433_v0  ;;  %v158_v12 = vld [vmem:[#allocation7 + $0x48] sm:$0xff]  ;;  %v157_v13 = vld [vmem:[#allocation7 + $0x40] sm:$0xff]  ;;  %v156_v14 = vld [vmem:[#allocation7 + $0x38] sm:$0xff] }
  0x2a   :  { %291 = vmatpush3.msra.mxu0 %v63_v2  ;;  %302 = vmatpush3.msra.mxu1 %v163_v5  ;;  %v155_v15 = vld [vmem:[#allocation7 + $0x30] sm:$0xff]  ;;  %v154_v16 = vld [vmem:[#allocation7 + $0x28] sm:$0xff]  ;;  %v153_v17 = vld [vmem:[#allocation7 + $0x20] sm:$0xff] }
  0x2b   :  { %292 = vmatprep.subr.mxu0 %v433_v0  ;;  %303 = vmatprep.subr.mxu1 %v433_v0  ;;  %v152_v18 = vld [vmem:[#allocation7 + $0x18] sm:$0xff]  ;;  %v151_v19 = vld [vmem:[#allocation7 + $0x10] sm:$0xff]  ;;  %v150_v20 = vld [vmem:[#allocation7 + $0x8] sm:$0xff] }
  0x2c   :  { %293 = vmatpush3.msra.mxu0 %v62_v4  ;;  %304 = vmatpush3.msra.mxu1 %v162_v6  ;;  %v149_v21 = vld [vmem:[#allocation7] sm:$0xff]  ;;  %v263_v22 = vld [vmem:[%s508_s2] ss:$0 sm:$0xff]  ;;  %s402_s2 = scalar_lea.vmem %s254_s12, 128 }
  0x2d   :  { %294 = vmatprep.subr.mxu0 %v433_v0  ;;  %305 = vmatprep.subr.mxu1 %v433_v0  ;;  %v265_v28 = vld [vmem:[%s510_s4] ss:$0 sm:$0xff]  ;;  %p403_p1 = scmp.ne.s32.totalorder %s254_s12, %s402_s2  ;;  %p408_p3 = scmp.lt.s32.totalorder %s402_s2, %s402_s2 }
  0x2e   :  { %295 = vmatpush3.msra.mxu0 %v61_v7  ;;  %306 = vmatpush3.msra.mxu1 %v161_v9 }
  0x2f   :  { %297 = vmatmul.mubr.msk.f32.vlgmr.msra.gmra.mxu0 %vm72_vm1, %v60_v8  ;;  %307 = vmatprep.subr.mxu1 %v433_v0  ;;  %p409_p4 = por %p408_p3, %p407_p2 }
  0x30   :  { %308 = vmatpush3.msra.mxu1 %v160_v10 }
  0x31   :  { %309 = vmatprep.subr.mxu1 %v433_v0  ;;  %p410_p5 = pnand %p409_p4, %p403_p1 }
  0x32   :  { %310 = vmatpush3.msra.mxu1 %v159_v11 }
  0x33   :  { %311 = vmatprep.subr.mxu1 %v433_v0 }
  0x34   :  { %312 = vmatpush3.msra.mxu1 %v158_v12 }
  0x35   :  { %313 = vmatprep.subr.mxu1 %v433_v0 }
  0x36   :  { %314 = vmatpush3.msra.mxu1 %v157_v13 }
  0x37   :  { %315 = vmatprep.subr.mxu1 %v433_v0 }
  0x38   :  { %316 = vmatpush3.msra.mxu1 %v156_v14 }
  0x39   :  { %317 = vmatprep.subr.mxu1 %v433_v0 }
  0x3a   :  { %318 = vmatpush3.msra.mxu1 %v155_v15 }
  0x3b   :  { %319 = vmatprep.subr.mxu1 %v433_v0 }
  0x3c   :  { %320 = vmatpush3.msra.mxu1 %v154_v16 }
  0x3d   :  { %321 = vmatprep.subr.mxu1 %v433_v0 }
  0x3e   :  { %322 = vmatpush3.msra.mxu1 %v153_v17 }
  0x3f   :  { %323 = vmatprep.subr.mxu1 %v433_v0 }
  0x40   :  { %324 = vmatpush3.msra.mxu1 %v152_v18 }
  0x41   :  { %325 = vmatprep.subr.mxu1 %v433_v0 }
  0x42   :  { %326 = vmatpush3.msra.mxu1 %v151_v19 }
  0x43   :  { %327 = vmatprep.subr.mxu1 %v433_v0 }
  0x44   :  { %328 = vmatpush3.msra.mxu1 %v150_v20 }
  0x45   :  { %329 = vmatprep.subr.mxu1 %v433_v0 }
  0x46   :  { %330 = vmatpush3.msra.mxu1 %v149_v21 }
  0xef   :  { %v142_v23 = vpop.f32.mrf.mxu0 }
  0xf0   :  { %v143_v24 = vadd.f32 %v263_v22, %v142_v23 }
  0xf1   :  { %v298_v25 = vpop.f32.mrf.mxu0 }
  0xf2   :  { %v147_v26 = vmul.f32 0.01, %v143_v24  ;;  %vm146_vm2 = vcmp.ge.f32.partialorder %v143_v24, 0.0 }
  0xf4   :  { %v148_v27 = vsel %vm146_vm2, %v143_v24, %v147_v26 }
  0xf5   :  { %332 = vmatmul.mubr.f32.vlgmr.msra.gmra.mxu1 %v148_v27 }
 0x1b5   :  { %v238_v29 = vpop.f32.mrf.mxu1 }
 0x1b6   :  { %v239_v30 = vadd.f32 %v265_v28, %v238_v29 }
 0x1b7   :  { %v333_v31 = vpop.f32.mrf.mxu1 }
 0x1b8   :  { %vm242_vm3 = vcmp.ge.f32.partialorder %v239_v30, 0.0  ;;  %v243_v32 = vmul.f32 0.01, %v239_v30 }
 0x1ba   :  { %v244_v33 = vsel %vm242_vm3, %v239_v30, %v243_v32 }
 0x1bb   :  { %246 = vst.msk [vmem:[#allocation8] sm:$0xff] %vm245_vm4, %v244_v33 }
 0x1bc   :  { %413 = shalt.err (!%p410_p5)
}
 0x1bd   :  { %256 = dma.vmem_to_hbm [thread:$0]  %s254_s12, 128, %s511_s5, [#allocation4]  }
 0x1be   :  { %426 = dma.done.wait [#allocation4], 128  }
 0x1bf   :  { %427 = vsyncadd [#allocation4], 4294967168 }
 0x1c0   :  { %260 = vsyncpa [#allocation3], 1 }
 0x1c1   :  { %261 = vsyncpa [#allocation6], 1 }
 0x1c2   :  { %262 = vsyncpa [#allocation4], 1 }

</bundles_post_ra>
